<compile_context>
chip_gen: v7x
topology: tpu7x:2x2x1
jax: 0.10.0
libtpu: 0.0.40
codegen_flags: <defaults>
</compile_context>

<pallas_src>
import functools
import math

import jax
import jax.numpy as jnp
from jax.experimental import pallas as pl
from jax.experimental.pallas import tpu as pltpu


def _round_up(x, m):
    return (x + m - 1) // m * m


def _vmem_limit_bytes(estimated_bytes):
    """Per-generation VMEM budget: use the real capacity when queryable."""
    try:
        cap = int(pltpu.get_tpu_info().vmem_capacity_bytes)
    except Exception:
        cap = 64 * 1024 * 1024          # v7x-safe fallback
    headroom = 8 * 1024 * 1024
    want = max(2 * int(estimated_bytes), 32 * 1024 * 1024)
    return int(max(min(cap - headroom, want), 16 * 1024 * 1024))


def _mha_kernel(x_ref, wqkv_ref, bqkv_ref, wo_ref, bo_ref, o_ref, *,
                num_heads, head_dim):
    """One grid step = one (H, tile_m) slab of transposed tokens.

    Tokens (b*s) live on the 128-lane axis, features on sublanes, so every
    matmul and every softmax op is lane-dense.
    """
    H = num_heads * head_dim
    xt = x_ref[...]                                     # (H, tm) compute dtype
    tm = xt.shape[-1]

    # Fused Q|K|V projection, transposed: (3H, H) @ (H, tm) -> (3H, tm), f32 acc.
    qkv = jnp.dot(wqkv_ref[...], xt,
                  preferred_element_type=jnp.float32) + bqkv_ref[...]

    # Head split along the sublane axis only (hd is a multiple of 8 here).
    q = qkv[:H].reshape(num_heads, head_dim, tm)        # (nH, hd, tm)
    k = qkv[H:2 * H].reshape(num_heads, head_dim, tm)
    v = qkv[2 * H:].reshape(num_heads, head_dim, tm)

    # Attention over the HEADS axis per token (matches the PyTorch reshape).
    scale = 1.0 / math.sqrt(head_dim)
    # scores[n, m, r] = sum_d q[n, d, r] * k[m, d, r]
    scores = jnp.sum(q[:, None] * k[None, :], axis=2) * scale    # (nH, nH, tm)

    s_max = jnp.max(scores, axis=1, keepdims=True)                # (nH, 1, tm)
    p = jnp.exp(scores - s_max)
    denom = jnp.sum(p, axis=1, keepdims=True)
    p = p * pl.reciprocal(denom, approx=True)
    # TODO(synk): dropout(p) omitted -- identity in eval mode.

    # ctx[n, d, r] = sum_m p[n, m, r] * v[m, d, r]
    ctx = jnp.sum(p[:, :, None] * v[None, :], axis=1)             # (nH, hd, tm)
    ctx = ctx.reshape(H, tm).astype(wo_ref.dtype)

    out = jnp.dot(wo_ref[...], ctx,
                  preferred_element_type=jnp.float32) + bo_ref[...]
    o_ref[...] = out.astype(o_ref.dtype)


def prepare_mha_params(wq, bq, wk, bk, wv, bv, wo, bo, *,
                       compute_dtype=jnp.bfloat16):
    """Fuse / cast the Linear weights ONCE (hoisted out of the forward path).

    Weights are PyTorch-Linear style (out_features, in_features); no transposes
    are needed because the kernel works on transposed activations.
    """
    H = wq.shape[0]
    w_qkv = jnp.concatenate([wq, wk, wv], axis=0)                     # (3H, H)
    b_qkv = jnp.concatenate([bq, bk, bv]).astype(jnp.float32).reshape(3 * H, 1)
    w_o = wo                                                          # (H, H)
    b_o = bo.astype(jnp.float32).reshape(H, 1)
    if compute_dtype is not None:
        w_qkv = w_qkv.astype(compute_dtype)
        w_o = w_o.astype(compute_dtype)
    return {"w_qkv": w_qkv, "b_qkv": b_qkv, "w_o": w_o, "b_o": b_o,
            "compute_dtype": compute_dtype}


def multihead_attention_fused(x, params, *, num_heads, tile_m=512):
    """x: (B, S, H); params from prepare_mha_params()."""
    B, S, H = x.shape
    assert H % num_heads == 0
    head_dim = H // num_heads
    orig_dtype = x.dtype
    compute_dtype = params["compute_dtype"] or orig_dtype

    # Tokens onto the lane axis: (H, M) layout.
    M = B * S
    x_t = x.reshape(M, H).T.astype(compute_dtype)

    # Lane-aligned token tile; prefer >=2 grid steps so both v7x TensorCores
    # (and the software pipeline) have work.
    tile_m = _round_up(tile_m, 128)
    tm = min(tile_m, _round_up(M, 128))
    if M >= 256 and _round_up(M, tm) // tm < 2:
        tm = _round_up((tm + 1) // 2, 128)
    m_pad = _round_up(M, tm)
    if m_pad != M:
        x_t = jnp.pad(x_t, ((0, 0), (0, m_pad - M)))

    w_qkv, b_qkv = params["w_qkv"], params["b_qkv"]
    w_o, b_o = params["w_o"], params["b_o"]

    # VMEM budget from actual buffer sizes (weights + double-buffered
    # activation slabs + f32 in-kernel intermediates).
    cbytes = jnp.dtype(compute_dtype).itemsize
    obytes = jnp.dtype(orig_dtype).itemsize
    nH, hd = num_heads, head_dim
    est = (2 * (3 * H * H + H * H) * cbytes                # weights (2 bufs)
           + 2 * (3 * H + H) * 4                           # biases
           + 2 * H * tm * cbytes                           # input slab x2
           + 2 * H * tm * obytes                           # output slab x2
           + (3 * H + 2 * H + nH * nH * hd + 3 * nH * nH + nH * hd) * tm * 4)
    vmem_limit = _vmem_limit_bytes(est)

    kernel = functools.partial(_mha_kernel, num_heads=num_heads,
                               head_dim=head_dim)

    out_t = pl.pallas_call(
        kernel,
        out_shape=jax.ShapeDtypeStruct((H, m_pad), orig_dtype),
        grid=(m_pad // tm,),
        in_specs=[
            pl.BlockSpec((H, tm), lambda i: (0, i)),          # tokens
            pl.BlockSpec((3 * H, H), lambda i: (0, 0)),       # fused QKV weight
            pl.BlockSpec((3 * H, 1), lambda i: (0, 0)),       # fused QKV bias
            pl.BlockSpec((H, H), lambda i: (0, 0)),           # output weight
            pl.BlockSpec((H, 1), lambda i: (0, 0)),           # output bias
        ],
        out_specs=pl.BlockSpec((H, tm), lambda i: (0, i)),
        compiler_params=pltpu.CompilerParams(
            dimension_semantics=("parallel",),
            vmem_limit_bytes=vmem_limit),
    )(x_t, w_qkv, b_qkv, w_o, b_o)

    return out_t[:, :M].T.reshape(B, S, H)


def multihead_attention(x, wq, bq, wk, bk, wv, bv, wo, bo, *, num_heads,
                        tile_m=512, compute_dtype=jnp.bfloat16):
    """Convenience wrapper; for repeated calls use prepare_mha_params() once."""
    params = prepare_mha_params(wq, bq, wk, bk, wv, bv, wo, bo,
                                compute_dtype=compute_dtype)
    return multihead_attention_fused(x, params, num_heads=num_heads,
                                     tile_m=tile_m)


def reference_forward(x, wq, bq, wk, bk, wv, bv, wo, bo, *, num_heads):
    """Pure-JAX f32 replica of the PyTorch forward (eval mode)."""
    B, S, H = x.shape
    hd = H // num_heads
    q = (x @ wq.T + bq).reshape(B, S, num_heads, hd)
    k = (x @ wk.T + bk).reshape(B, S, num_heads, hd)
    v = (x @ wv.T + bv).reshape(B, S, num_heads, hd)
    att = jnp.einsum('bsnd,bsmd->bsnm', q, k) / math.sqrt(hd)
    att = jax.nn.softmax(att, axis=-1)
    out = jnp.einsum('bsnm,bsmd->bsnd', att, v).reshape(B, S, H)
    return out @ wo.T + bo


if __name__ == "__main__":
    B, S, H = 2, 8, 32
    num_heads = 4

    key = jax.random.PRNGKey(0)
    kx, kq, kk, kv, ko, kbq, kbk, kbv, kbo = jax.random.split(key, 9)

    x = jax.random.normal(kx, (B, S, H), dtype=jnp.float32)

    bound = 1.0 / math.sqrt(H)
    wq = jax.random.uniform(kq, (H, H), jnp.float32, -bound, bound)
    wk = jax.random.uniform(kk, (H, H), jnp.float32, -bound, bound)
    wv = jax.random.uniform(kv, (H, H), jnp.float32, -bound, bound)
    wo = jax.random.uniform(ko, (H, H), jnp.float32, -bound, bound)
    bq = jax.random.uniform(kbq, (H,), jnp.float32, -bound, bound)
    bk = jax.random.uniform(kbk, (H,), jnp.float32, -bound, bound)
    bv = jax.random.uniform(kbv, (H,), jnp.float32, -bound, bound)
    bo = jax.random.uniform(kbo, (H,), jnp.float32, -bound, bound)

    ref = reference_forward(x, wq, bq, wk, bk, wv, bv, wo, bo,
                            num_heads=num_heads)

    # Weight prep hoisted out of the forward path (done once, reused).
    params_bf16 = prepare_mha_params(wq, bq, wk, bk, wv, bv, wo, bo,
                                     compute_dtype=jnp.bfloat16)
    params_f32 = prepare_mha_params(wq, bq, wk, bk, wv, bv, wo, bo,
                                    compute_dtype=jnp.float32)

    out_bf16 = jax.block_until_ready(
        multihead_attention_fused(x, params_bf16, num_heads=num_heads))
    out_f32 = jax.block_until_ready(
        multihead_attention_fused(x, params_f32, num_heads=num_heads))

    assert out_bf16.shape == (B, S, H)
    assert out_f32.shape == (B, S, H)
    # f32 path: tight tolerance (approx EUP reciprocal only).
    assert jnp.allclose(out_f32, ref, atol=2e-3, rtol=2e-3), \
        "f32 kernel mismatch vs reference"
    # bf16 operand path (default): loose tolerance for bf16 operand rounding.
    assert jnp.allclose(out_bf16, ref, atol=5e-2, rtol=5e-2), \
        "bf16 kernel mismatch vs reference"

    print("KERNEL_OK")
</pallas_src>

<mosaic_0001>
module attributes {stable_mosaic.version = 11 : i64} {
  func.func @_mha_kernel(%arg0: i32, %arg1: memref<32x128xbf16, #tpu.memory_space<vmem>>, %arg2: memref<96x32xbf16, #tpu.memory_space<vmem>>, %arg3: memref<96x1xf32, #tpu.memory_space<vmem>>, %arg4: memref<32x32xbf16, #tpu.memory_space<vmem>>, %arg5: memref<32x1xf32, #tpu.memory_space<vmem>>, %arg6: memref<32x128xf32, #tpu.memory_space<vmem>>) attributes {dimension_semantics = [#tpu.dimension_semantics<parallel>], iteration_bounds = array<i64: 1>, scalar_prefetch = 0 : i64, scratch_operands = 0 : i64, tpu.core_type = #tpu.core_type<tc>, window_params = [{transform_indices = @transform_0, window_bounds = array<i64: 32, 128>}, {pipeline_mode = #tpu.pipeline_mode<synchronous>, transform_indices = @transform_1, window_bounds = array<i64: 96, 32>}, {pipeline_mode = #tpu.pipeline_mode<synchronous>, transform_indices = @transform_2, window_bounds = array<i64: 96, 1>}, {pipeline_mode = #tpu.pipeline_mode<synchronous>, transform_indices = @transform_3, window_bounds = array<i64: 32, 32>}, {pipeline_mode = #tpu.pipeline_mode<synchronous>, transform_indices = @transform_4, window_bounds = array<i64: 32, 1>}, {transform_indices = @transform_5, window_bounds = array<i64: 32, 128>}]} {
    %c0 = arith.constant 0 : index
    %c0_0 = arith.constant 0 : index
    %0 = vector.load %arg1[%c0, %c0_0] : memref<32x128xbf16, #tpu.memory_space<vmem>>, vector<32x128xbf16>
    %c0_1 = arith.constant 0 : index
    %c0_2 = arith.constant 0 : index
    %1 = vector.load %arg2[%c0_1, %c0_2] : memref<96x32xbf16, #tpu.memory_space<vmem>>, vector<96x32xbf16>
    %cst = arith.constant dense<0.000000e+00> : vector<96x128xf32>
    %2 = tpu.matmul %1, %0, %cst {dimension_numbers = #tpu.dot_dimension_numbers<[1], [0], [0], [1], [0, 0, 1, 1], [], []>} : vector<96x32xbf16>, vector<32x128xbf16>, vector<96x128xf32> -> vector<96x128xf32>
    %c0_3 = arith.constant 0 : index
    %c0_4 = arith.constant 0 : index
    %3 = vector.load %arg3[%c0_3, %c0_4] : memref<96x1xf32, #tpu.memory_space<vmem>>, vector<96x1xf32>
    %4 = vector.broadcast %3 : vector<96x1xf32> to vector<96x128xf32>
    %5 = arith.addf %2, %4 : vector<96x128xf32>
    %6 = vector.extract_strided_slice %5 {offsets = [0, 0], sizes = [32, 128], strides = [1, 1]} : vector<96x128xf32> to vector<32x128xf32>
    %7 = vector.shape_cast %6 : vector<32x128xf32> to vector<4x8x128xf32>
    %8 = vector.extract_strided_slice %5 {offsets = [32, 0], sizes = [32, 128], strides = [1, 1]} : vector<96x128xf32> to vector<32x128xf32>
    %9 = vector.shape_cast %8 : vector<32x128xf32> to vector<4x8x128xf32>
    %10 = vector.extract_strided_slice %5 {offsets = [64, 0], sizes = [32, 128], strides = [1, 1]} : vector<96x128xf32> to vector<32x128xf32>
    %11 = vector.shape_cast %10 : vector<32x128xf32> to vector<4x8x128xf32>
    %12 = vector.shape_cast %7 : vector<4x8x128xf32> to vector<4x1x8x128xf32>
    %13 = vector.shape_cast %9 : vector<4x8x128xf32> to vector<1x4x8x128xf32>
    %14 = vector.broadcast %12 : vector<4x1x8x128xf32> to vector<4x4x8x128xf32>
    %15 = vector.broadcast %13 : vector<1x4x8x128xf32> to vector<4x4x8x128xf32>
    %16 = arith.mulf %14, %15 : vector<4x4x8x128xf32>
    %cst_5 = arith.constant dense<0.000000e+00> : vector<4x4x128xf32>
    %17 = vector.multi_reduction <add>, %16, %cst_5 [2] : vector<4x4x8x128xf32> to vector<4x4x128xf32>
    %cst_6 = arith.constant 0.353553385 : f32
    %18 = vector.broadcast %cst_6 : f32 to vector<4x4x128xf32>
    %19 = arith.mulf %17, %18 : vector<4x4x128xf32>
    %cst_7 = arith.constant dense<0xFF800000> : vector<4x128xf32>
    %20 = vector.multi_reduction <maximumf>, %19, %cst_7 [1] : vector<4x4x128xf32> to vector<4x128xf32>
    %21 = vector.shape_cast %20 : vector<4x128xf32> to vector<4x1x128xf32>
    %22 = vector.broadcast %21 : vector<4x1x128xf32> to vector<4x4x128xf32>
    %23 = arith.subf %19, %22 : vector<4x4x128xf32>
    %24 = math.exp %23 : vector<4x4x128xf32>
    %cst_8 = arith.constant dense<0.000000e+00> : vector<4x128xf32>
    %25 = vector.multi_reduction <add>, %24, %cst_8 [1] : vector<4x4x128xf32> to vector<4x128xf32>
    %26 = vector.shape_cast %25 : vector<4x128xf32> to vector<4x1x128xf32>
    %27 = tpu.reciprocal %26 {approx = true} : vector<4x1x128xf32> -> vector<4x1x128xf32>
    %28 = vector.broadcast %27 : vector<4x1x128xf32> to vector<4x4x128xf32>
    %29 = arith.mulf %24, %28 : vector<4x4x128xf32>
    %30 = vector.shape_cast %29 : vector<4x4x128xf32> to vector<4x4x1x128xf32>
    %31 = vector.shape_cast %11 : vector<4x8x128xf32> to vector<1x4x8x128xf32>
    %32 = vector.broadcast %30 : vector<4x4x1x128xf32> to vector<4x4x8x128xf32>
    %33 = vector.broadcast %31 : vector<1x4x8x128xf32> to vector<4x4x8x128xf32>
    %34 = arith.mulf %32, %33 : vector<4x4x8x128xf32>
    %cst_9 = arith.constant dense<0.000000e+00> : vector<4x8x128xf32>
    %35 = vector.multi_reduction <add>, %34, %cst_9 [1] : vector<4x4x8x128xf32> to vector<4x8x128xf32>
    %36 = vector.shape_cast %35 : vector<4x8x128xf32> to vector<32x128xf32>
    %37 = arith.truncf %36 : vector<32x128xf32> to vector<32x128xbf16>
    %c0_10 = arith.constant 0 : index
    %c0_11 = arith.constant 0 : index
    %38 = vector.load %arg4[%c0_10, %c0_11] : memref<32x32xbf16, #tpu.memory_space<vmem>>, vector<32x32xbf16>
    %cst_12 = arith.constant dense<0.000000e+00> : vector<32x128xf32>
    %39 = tpu.matmul %38, %37, %cst_12 {dimension_numbers = #tpu.dot_dimension_numbers<[1], [0], [0], [1], [0, 0, 1, 1], [], []>} : vector<32x32xbf16>, vector<32x128xbf16>, vector<32x128xf32> -> vector<32x128xf32>
    %c0_13 = arith.constant 0 : index
    %c0_14 = arith.constant 0 : index
    %40 = vector.load %arg5[%c0_13, %c0_14] : memref<32x1xf32, #tpu.memory_space<vmem>>, vector<32x1xf32>
    %41 = vector.broadcast %40 : vector<32x1xf32> to vector<32x128xf32>
    %42 = arith.addf %39, %41 : vector<32x128xf32>
    %c0_15 = arith.constant 0 : index
    %c0_16 = arith.constant 0 : index
    %43 = vector.load %arg6[%c0_15, %c0_16] : memref<32x128xf32, #tpu.memory_space<vmem>>, vector<32x128xf32>
    tpu.vector_store %arg6[%c0_15, %c0_16], %42 {strides = array<i32>} : memref<32x128xf32, #tpu.memory_space<vmem>>, vector<32x128xf32>,
    return
  }
  func.func @transform_0(%arg0: i32) -> (i32, i32) {
    %c0_i32 = arith.constant 0 : i32
    %c0_i32_0 = arith.constant 0 : i32
    return %c0_i32, %arg0 : i32, i32
  }
  func.func @transform_1(%arg0: i32) -> (i32, i32) {
    %c0_i32 = arith.constant 0 : i32
    %c0_i32_0 = arith.constant 0 : i32
    %c0_i32_1 = arith.constant 0 : i32
    return %c0_i32, %c0_i32_0 : i32, i32
  }
  func.func @transform_2(%arg0: i32) -> (i32, i32) {
    %c0_i32 = arith.constant 0 : i32
    %c0_i32_0 = arith.constant 0 : i32
    %c0_i32_1 = arith.constant 0 : i32
    return %c0_i32, %c0_i32_0 : i32, i32
  }
  func.func @transform_3(%arg0: i32) -> (i32, i32) {
    %c0_i32 = arith.constant 0 : i32
    %c0_i32_0 = arith.constant 0 : i32
    %c0_i32_1 = arith.constant 0 : i32
    return %c0_i32, %c0_i32_0 : i32, i32
  }
  func.func @transform_4(%arg0: i32) -> (i32, i32) {
    %c0_i32 = arith.constant 0 : i32
    %c0_i32_0 = arith.constant 0 : i32
    %c0_i32_1 = arith.constant 0 : i32
    return %c0_i32, %c0_i32_0 : i32, i32
  }
  func.func @transform_5(%arg0: i32) -> (i32, i32) {
    %c0_i32 = arith.constant 0 : i32
    %c0_i32_0 = arith.constant 0 : i32
    return %c0_i32, %arg0 : i32, i32
  }
}

</mosaic_0001>

<bundles_post_ra>
// kernel: tpu_custom_call.1
= control target key start
LH: loop header
LB: loop body
LE: loop exit
PB: predicated region body
PF: predicated region fallthrough
CT: control target
= control target key end

     0   :  { %vm152_vm0 = vcmask 261120   ;;  %v897_v6 = vmov 0   ;;  %s1197_s0 = inlined_call_operand.vmem [shape: bf16[32,128], index: 0, kind: input, shape index: {}]   ;;  %s1198_s1 = inlined_call_operand.vmem [shape: bf16[96,32], index: 1, kind: input, shape index: {}]   ;;  %s1199_s2 = inlined_call_operand.vmem [shape: f32[96,1], index: 2, kind: input, shape index: {}]   ;;  %s1200_s3 = inlined_call_operand.vmem [shape: bf16[32,32], index: 3, kind: input, shape index: {}]   ;;  %s1201_s4 = inlined_call_operand.vmem [shape: f32[32,1], index: 4, kind: input, shape index: {}]   ;;  %s1202_s5 = inlined_call_operand.hbm [shape: f32[32,128], index: 5, kind: output, shape index: {}]  }
   0x1   :  { %v823_v0 = vld [vmem:[%s1197_s0] sm:$0xff]   ;;  %v824_v1 = vld [vmem:[%s1197_s0 + $0x8] sm:$0xff]   ;;  %822 = vset.pattern.permute.xlu1 %v897_v6  ;;  %821 = vset.pattern.permute.xlu0 %v897_v6  ;;  %v829_v7 = vld [vmem:[%s1198_s1 + $0x10] sm:$0xff]  }
   0x2   :  { %789 = vmatprep.subr.bf16.mxu0 %v823_v0  ;;  %813 = vmatprep.subr.bf16.mxu1 %v823_v0  ;;  %v825_v2 = vld [vmem:[%s1198_s1] sm:$0xff]   ;;  %v827_v4 = vld [vmem:[%s1198_s1 + $0x8] sm:$0xff]   ;;  %v830_v12 = vld [vmem:[%s1198_s1 + $0x18] sm:$0xff]  }
   0x3   :  { %790 = vmatpush3.bf16.msra.mxu0 %v823_v0  ;;  %815 = vmatpush3.bf16.msra.mxu1 %v823_v0  ;;  %v826_v3 = vld [vmem:[%s1198_s1 + $0x20] sm:$0xff]   ;;  %v828_v5 = vld [vmem:[%s1198_s1 + $0x28] sm:$0xff]   ;;  %v40_v13 = vld [vmem:[%s1199_s2 + $0x10] sm:$0xff] }
   0x4   :  { %791 = vmatprep.subr.bf16.mxu0 %v824_v1  ;;  %814 = vmatprep.subr.bf16.mxu1 %v824_v1  ;;  %v42_v8 = vld [vmem:[%s1199_s2 + $0x20] sm:$0xff]  ;;  %v43_v10 = vld [vmem:[%s1199_s2 + $0x28] sm:$0xff]  ;;  %v44_v14 = vld [vmem:[%s1199_s2 + $0x30] sm:$0xff] }
   0x5   :  { %793 = vmatprep.mubr.msk.bf16.mxu0 %vm152_vm0, %v825_v2  ;;  %801 = vmatprep.mubr.msk.bf16.mxu1 %vm152_vm0, %v826_v3  ;;  %v38_v9 = vld [vmem:[%s1199_s2] sm:$0xff]  ;;  %v39_v11 = vld [vmem:[%s1199_s2 + $0x8] sm:$0xff] }
   0x6   :  { %72 = vperm.xlu1 %822, %v42_v8   ;;  %52 = vperm.xlu0 %821, %v38_v9  }
   0x7   :  { %792 = vmatpush3.bf16.msra.mxu0 %v824_v1  ;;  %816 = vmatpush3.bf16.msra.mxu1 %v824_v1 }
   0xa   :  { %794 = vmatmul.mubr.msk.bf16.vlgmr.msra.gmra.mrb[0].mxu0 %vm152_vm0, %v827_v4  ;;  %802 = vmatmul.mubr.msk.bf16.vlgmr.msra.gmra.mrb[0].mxu1 %vm152_vm0, %v828_v5 }
   0xb   :  { %797 = vmatprep.mubr.msk.bf16.mxu0 %vm152_vm0, %v829_v7  ;;  %77 = vperm.xlu1 %822, %v43_v10  }
   0xc   :  { %57 = vperm.xlu0 %821, %v39_v11  }
   0xd   :  { %10 = vsyncpa [#allocation3], 0  ;;  %v45_v15 = vld [vmem:[%s1199_s2 + $0x38] sm:$0xff]  ;;  %v47_v17 = vld [vmem:[%s1199_s2 + $0x48] sm:$0xff]  ;;  %vm457_vm1 = vcmask 1041409   ;;  %vm460_vm2 = vcmask 1042434  }
   0xe   :  { %v41_v16 = vld [vmem:[%s1199_s2 + $0x18] sm:$0xff]  ;;  %v46_v18 = vld [vmem:[%s1199_s2 + $0x40] sm:$0xff]  ;;  %v48_v20 = vld [vmem:[%s1199_s2 + $0x50] sm:$0xff]  ;;  %vm463_vm3 = vcmask 1043459   ;;  %vm487_vm4 = vcmask 1043456   ;;  %s898_s15 = smov [#allocation2]  }
   0xf   :  { %62 = vperm.xlu1 %822, %v40_v13   ;;  %v49_v19 = vld [vmem:[%s1199_s2 + $0x58] sm:$0xff]  ;;  %v651_v21 = vld [vmem:[%s1201_s4 + $0x8] sm:$0xff]  ;;  %v650_v22 = vld [vmem:[%s1201_s4] sm:$0xff]  ;;  %s748_s16 = sshll.u32 %s898_s15, 4  ;;  %s749_s16 = int_to_ptr.vmem [resolvable:$true] %s748_s16 }
  0x10   :  { %82 = vperm.xlu0 %821, %v44_v14   ;;  %v653_v23 = vld [vmem:[%s1201_s4 + $0x18] sm:$0xff]  ;;  %v652_v24 = vld [vmem:[%s1201_s4 + $0x10] sm:$0xff]  ;;  %v831_v28 = vld [vmem:[%s1200_s3] sm:$0xff]   ;;  %p878_p1 = scmp.lt.s32.totalorder %s749_s16, %s749_s16 }
  0x11   :  { %809 = vmatprep.mubr.msk.bf16.mxu1 %vm152_vm0, %v831_v28 }
  0x12   :  { %798 = vmatmul.mubr.msk.bf16.gmra.mrb[4].mxu0 %vm152_vm0, %v830_v12 }
  0x13   :  { %87 = vperm.xlu1 %822, %v45_v15  }
  0x14   :  { %67 = vperm.xlu0 %821, %v41_v16  }
  0x17   :  { %97 = vperm.xlu1 %822, %v47_v17  }
  0x18   :  { %92 = vperm.xlu0 %821, %v46_v18  }
  0x1b   :  { %107 = vperm.xlu1 %822, %v49_v19  }
  0x1c   :  { %102 = vperm.xlu0 %821, %v48_v20  }
  0x1f   :  { %661 = vperm.xlu1 %822, %v651_v21  }
  0x20   :  { %656 = vperm.xlu0 %821, %v650_v22  }
  0x23   :  { %671 = vperm.xlu1 %822, %v653_v23  }
  0x24   :  { %666 = vperm.xlu0 %821, %v652_v24  }
  0x85   :  { %v53_v25 = vpop.permute.xlu0 %52  ;;  %v73_v26 = vpop.permute.xlu1 %72 }
  0x8a   :  { %v1012_v29 = vpop.permute.xlu1 %77 }
  0x8b   :  { %v58_v27 = vpop.permute.xlu0 %57 }
  0x8e   :  { %v63_v39 = vpop.permute.xlu1 %62 }
  0x8f   :  { %v83_v30 = vpop.permute.xlu0 %82 }
  0x93   :  { %v68_v40 = vpop.permute.xlu0 %67 }
  0xdd   :  { %v795_v31 = vpop.f32.mrb[0].mxu0  ;;  %v1014_v32 = vpop.f32.mrb[0].mxu1 }
  0xde   :  { %v205_v33 = vpop.f32.mrb[1].mxu0  ;;  %v1017_v34 = vpop.f32.mrb[1].mxu1  ;;  %v1023_v41 = vadd.f32 %v795_v31, %v63_v39 }
  0xdf   :  { %v796_v35 = vpop.f32.mrb[2].mxu0  ;;  %v1019_v36 = vpop.f32.mrb[2].mxu1  ;;  %v1025_v43 = vadd.f32 %v205_v33, %v53_v25 }
  0xe0   :  { %v208_v37 = vpop.f32.mrb[3].mxu0  ;;  %v1021_v38 = vpop.f32.mrb[3].mxu1  ;;  %v1027_v44 = vadd.f32 %v796_v35, %v68_v40 }
  0xe1   :  { %v1029_v45 = vadd.f32 %v208_v37, %v58_v27  ;;  %v88_v37 = vpop.permute.xlu1 %87 }
  0xe5   :  { %v799_v42 = vpop.f32.mrb[4].mxu0 }
  0xe6   :  { %v230_v46 = vadd.f32 %v799_v42, %v83_v30  ;;  %v221_v47 = vpop.f32.mrb[5].mxu0 }
  0xe7   :  { %v222_v48 = vadd.f32 %v221_v47, %v73_v26  ;;  %v800_v49 = vpop.f32.mrb[6].mxu0 }
  0xe8   :  { %v254_v50 = vmul.f32 %v230_v46, %v1025_v43  ;;  %v258_v51 = vmul.f32 %v230_v46, %v1029_v45  ;;  %v262_v52 = vmul.f32 %v230_v46, %v1023_v41  ;;  %v266_v53 = vmul.f32 %v230_v46, %v1027_v44  ;;  %v224_v54 = vpop.f32.mrb[7].mxu0 }
  0xe9   :  { %v252_v55 = vmul.f32 %v222_v48, %v1025_v43  ;;  %v256_v56 = vmul.f32 %v222_v48, %v1029_v45  ;;  %v260_v57 = vmul.f32 %v222_v48, %v1023_v41  ;;  %v264_v58 = vmul.f32 %v222_v48, %v1027_v44 }
  0xea   :  { %v280_v59 = vrot.slane %v254_v50, 4  ;;  %v304_v60 = vrot.slane %v258_v51, 4  ;;  %v328_v61 = vrot.slane %v262_v52, 4  ;;  %v352_v62 = vrot.slane %v266_v53, 4 }
  0xeb   :  { %v268_v63 = vrot.slane %v252_v55, 4  ;;  %v292_v0 = vrot.slane %v256_v56, 4  ;;  %v316_v1 = vrot.slane %v260_v57, 4  ;;  %v340_v2 = vrot.slane %v264_v58, 4 }
  0xec   :  { %v281_v3 = vadd.f32 %v280_v59, %v254_v50  ;;  %v305_v4 = vadd.f32 %v304_v60, %v258_v51  ;;  %v329_v5 = vadd.f32 %v328_v61, %v262_v52  ;;  %v353_v6 = vadd.f32 %v352_v62, %v266_v53 }
  0xed   :  { %v269_v7 = vadd.f32 %v268_v63, %v252_v55  ;;  %v293_v8 = vadd.f32 %v292_v0, %v256_v56  ;;  %v317_v9 = vadd.f32 %v316_v1, %v260_v57  ;;  %v341_v10 = vadd.f32 %v340_v2, %v264_v58 }
  0xee   :  { %v282_v11 = vrot.slane %v281_v3, 2  ;;  %v306_v12 = vrot.slane %v305_v4, 2  ;;  %v330_v13 = vrot.slane %v329_v5, 2  ;;  %v354_v14 = vrot.slane %v353_v6, 2 }
  0xef   :  { %v270_v15 = vrot.slane %v269_v7, 2  ;;  %v294_v16 = vrot.slane %v293_v8, 2  ;;  %v318_v17 = vrot.slane %v317_v9, 2  ;;  %v342_v18 = vrot.slane %v341_v10, 2 }
  0xf0   :  { %v283_v19 = vadd.f32 %v282_v11, %v281_v3  ;;  %v307_v20 = vadd.f32 %v306_v12, %v305_v4  ;;  %v331_v21 = vadd.f32 %v330_v13, %v329_v5  ;;  %v1039_v26 = vadd.f32 %v354_v14, %v353_v6 }
  0xf1   :  { %v271_v22 = vadd.f32 %v270_v15, %v269_v7  ;;  %v295_v23 = vadd.f32 %v294_v16, %v293_v8  ;;  %v319_v24 = vadd.f32 %v318_v17, %v317_v9  ;;  %v343_v27 = vadd.f32 %v342_v18, %v341_v10 }
  0xf2   :  { %v284_v25 = vrot.slane %v283_v19, 1  ;;  %v308_v28 = vrot.slane %v307_v20, 1  ;;  %v332_v30 = vrot.slane %v331_v21, 1  ;;  %v356_v40 = vrot.slane %v1039_v26, 1 }
  0xf3   :  { %v272_v31 = vrot.slane %v271_v22, 1  ;;  %v296_v33 = vrot.slane %v295_v23, 1  ;;  %v320_v35 = vrot.slane %v319_v24, 1  ;;  %v344_v42 = vrot.slane %v343_v27, 1 }
  0xf4   :  { %v1041_v39 = vadd.f32 %v284_v25, %v283_v19  ;;  %v233_v46 = vadd.f32 %v800_v49, %v88_v37  ;;  %v1044_v47 = vadd.f32 %v308_v28, %v307_v20  ;;  %v1046_v48 = vadd.f32 %v332_v30, %v331_v21 }
  0xf5   :  { %v273_v50 = vadd.f32 %v272_v31, %v271_v22  ;;  %v225_v51 = vadd.f32 %v224_v54, %v1012_v29  ;;  %v297_v52 = vadd.f32 %v296_v33, %v295_v23  ;;  %v321_v53 = vadd.f32 %v320_v35, %v319_v24 }
  0xf6   :  { %v255_v55 = vmul.f32 %v233_v46, %v1025_v43  ;;  %v259_v56 = vmul.f32 %v233_v46, %v1029_v45  ;;  %v263_v57 = vmul.f32 %v233_v46, %v1023_v41  ;;  %v267_v58 = vmul.f32 %v233_v46, %v1027_v44 }
  0xf7   :  { %v253_v59 = vmul.f32 %v225_v51, %v1025_v43  ;;  %v257_v49 = vmul.f32 %v225_v51, %v1029_v45  ;;  %v261_v62 = vmul.f32 %v225_v51, %v1023_v41  ;;  %v265_v29 = vmul.f32 %v225_v51, %v1027_v44 }
  0xf8   :  { %v286_v60 = vrot.slane %v255_v55, 4  ;;  %v310_v61 = vrot.slane %v259_v56, 4  ;;  %v334_v54 = vrot.slane %v263_v57, 4  ;;  %v358_v63 = vrot.slane %v267_v58, 4 }
  0xf9   :  { %v274_v0 = vrot.slane %v253_v59, 4  ;;  %v298_v1 = vrot.slane %v257_v49, 4  ;;  %v322_v4 = vrot.slane %v261_v62, 4  ;;  %v346_v5 = vrot.slane %v265_v29, 4 }
  0xfa   :  { %v287_v2 = vadd.f32 %v286_v60, %v255_v55  ;;  %v311_v3 = vadd.f32 %v310_v61, %v259_v56  ;;  %v335_v6 = vadd.f32 %v334_v54, %v263_v57  ;;  %v359_v7 = vadd.f32 %v358_v63, %v267_v58 }
  0xfb   :  { %v275_v8 = vadd.f32 %v274_v0, %v253_v59  ;;  %v299_v43 = vadd.f32 %v298_v1, %v257_v49  ;;  %v323_v10 = vadd.f32 %v322_v4, %v261_v62  ;;  %v347_v11 = vadd.f32 %v346_v5, %v265_v29 }
  0xfc   :  { %v288_v9 = vrot.slane %v287_v2, 2  ;;  %v312_v45 = vrot.slane %v311_v3, 2  ;;  %v336_v12 = vrot.slane %v335_v6, 2  ;;  %v360_v41 = vrot.slane %v359_v7, 2 }
  0xfd   :  { %v276_v13 = vrot.slane %v275_v8, 2  ;;  %v300_v44 = vrot.slane %v299_v43, 2  ;;  %v324_v16 = vrot.slane %v323_v10, 2  ;;  %v348_v17 = vrot.slane %v347_v11, 2 }
  0xfe   :  { %v289_v14 = vadd.f32 %v288_v9, %v287_v2  ;;  %v313_v15 = vadd.f32 %v312_v45, %v311_v3  ;;  %v337_v18 = vadd.f32 %v336_v12, %v335_v6  ;;  %v361_v19 = vadd.f32 %v360_v41, %v359_v7 }
  0xff   :  { %v277_v20 = vadd.f32 %v276_v13, %v275_v8  ;;  %v301_v21 = vadd.f32 %v300_v44, %v299_v43  ;;  %v345_v22 = vadd.f32 %v344_v42, %v343_v27  ;;  %v325_v24 = vadd.f32 %v324_v16, %v323_v10 }
 0x100   :  { %v290_v23 = vrot.slane %v289_v14, 1  ;;  %v349_v25 = vadd.f32 %v348_v17, %v347_v11  ;;  %v314_v28 = vrot.slane %v313_v15, 1  ;;  %v338_v30 = vrot.slane %v337_v18, 1 }
 0x101   :  { %v278_v31 = vrot.slane %v277_v20, 1  ;;  %v302_v33 = vrot.slane %v301_v21, 1  ;;  %v357_v35 = vadd.f32 %v356_v40, %v1039_v26  ;;  %v362_v37 = vrot.slane %v361_v19, 1 }
 0x102   :  { %v326_v46 = vrot.slane %v325_v24, 1  ;;  %v350_v51 = vrot.slane %v349_v25, 1  ;;  %v364_v55 = vmul.f32 0.35355338, %v273_v50  ;;  %v368_v56 = vmul.f32 0.35355338, %v297_v52 }
 0x103   :  { %v279_v57 = vadd.f32 %v278_v31, %v277_v20  ;;  %v303_v58 = vadd.f32 %v302_v33, %v301_v21  ;;  %v1058_v59 = vmul.f32 0.35355338, %v321_v53  ;;  %v1060_v49 = vmul.f32 0.35355338, %v345_v22 }
 0x104   :  { %v327_v27 = vadd.f32 %v326_v46, %v325_v24  ;;  %v351_v42 = vadd.f32 %v350_v51, %v349_v25  ;;  %v291_v60 = vadd.f32 %v290_v23, %v289_v14  ;;  %v315_v61 = vadd.f32 %v314_v28, %v313_v15 }
 0x105   :  { %v339_v62 = vadd.f32 %v338_v30, %v337_v18  ;;  %v365_v29 = vmul.f32 0.35355338, %v279_v57  ;;  %v363_v54 = vadd.f32 %v362_v37, %v361_v19  ;;  %v369_v63 = vmul.f32 0.35355338, %v303_v58 }
 0x106   :  { %v373_v26 = vmul.f32 0.35355338, %v327_v27  ;;  %v377_v40 = vmul.f32 0.35355338, %v351_v42  ;;  %v366_v0 = vmul.f32 0.35355338, %v1041_v39 }
 0x107   :  { %v370_v50 = vmul.f32 0.35355338, %v1044_v47  ;;  %v374_v52 = vmul.f32 0.35355338, %v1046_v48  ;;  %v380_v53 = vmax.f32 %v364_v55, %v365_v29  ;;  %v378_v1 = vmul.f32 0.35355338, %v357_v35 }
 0x108   :  { %v383_v2 = vmax.f32 %v368_v56, %v369_v63  ;;  %v386_v3 = vmax.f32 %v1058_v59, %v373_v26  ;;  %v389_v4 = vmax.f32 %v1060_v49, %v377_v40  ;;  %v367_v5 = vmul.f32 0.35355338, %v291_v60 }
 0x109   :  { %v371_v6 = vmul.f32 0.35355338, %v315_v61  ;;  %v375_v7 = vmul.f32 0.35355338, %v339_v62  ;;  %v381_v8 = vmax.f32 %v380_v53, %v366_v0  ;;  %v379_v43 = vmul.f32 0.35355338, %v363_v54 }
 0x10a   :  { %v384_v9 = vmax.f32 %v383_v2, %v370_v50  ;;  %v387_v45 = vmax.f32 %v386_v3, %v374_v52  ;;  %v390_v10 = vmax.f32 %v389_v4, %v378_v1 }
 0x10b   :  { %v382_v39 = vmax.f32 %v381_v8, %v367_v5 }
 0x10c   :  { %v385_v11 = vmax.f32 %v384_v9, %v371_v6  ;;  %v388_v47 = vmax.f32 %v387_v45, %v375_v7  ;;  %v391_v12 = vmax.f32 %v390_v10, %v379_v43 }
 0x10d   :  { %v393_v48 = vsub.f32 %v365_v29, %v382_v39  ;;  %v392_v41 = vsub.f32 %v364_v55, %v382_v39  ;;  %v394_v13 = vsub.f32 %v366_v0, %v382_v39  ;;  %v395_v44 = vsub.f32 %v367_v5, %v382_v39 }
 0x10e   :  { %v397_v14 = vsub.f32 %v369_v63, %v385_v11  ;;  %v401_v15 = vsub.f32 %v373_v26, %v388_v47  ;;  %v405_v16 = vsub.f32 %v377_v40, %v391_v12  ;;  %v396_v17 = vsub.f32 %v368_v56, %v385_v11 }
 0x10f   :  { %v410_v18 = vmul.f32 1.442695, %v393_v48  ;;  %v398_v19 = vsub.f32 %v370_v50, %v385_v11  ;;  %v399_v20 = vsub.f32 %v371_v6, %v385_v11  ;;  %v400_v24 = vsub.f32 %v1058_v59, %v388_v47 }
 0x110   :  { %v418_v21 = vmul.f32 1.442695, %v397_v14  ;;  %v426_v22 = vmul.f32 1.442695, %v401_v15  ;;  %v434_v23 = vmul.f32 1.442695, %v405_v16  ;;  %v402_v31 = vsub.f32 %v374_v52, %v388_v47 }
 0x111   :  { %833 = vpow2.f32 %v410_v18  ;;  %v408_v25 = vmul.f32 1.442695, %v392_v41  ;;  %v412_v28 = vmul.f32 1.442695, %v394_v13  ;;  %v414_v30 = vmul.f32 1.442695, %v395_v44 }
 0x112   :  { %835 = vpow2.f32 %v418_v21  ;;  %v403_v33 = vsub.f32 %v375_v7, %v388_v47  ;;  %v404_v35 = vsub.f32 %v1060_v49, %v391_v12  ;;  %v406_v37 = vsub.f32 %v378_v1, %v391_v12 }
 0x113   :  { %837 = vpow2.f32 %v426_v22  ;;  %v416_v46 = vmul.f32 1.442695, %v396_v17  ;;  %v407_v51 = vsub.f32 %v379_v43, %v391_v12  ;;  %v420_v55 = vmul.f32 1.442695, %v398_v19 }
 0x114   :  { %839 = vpow2.f32 %v434_v23  ;;  %v422_v56 = vmul.f32 1.442695, %v399_v20  ;;  %v424_v57 = vmul.f32 1.442695, %v400_v24  ;;  %v428_v58 = vmul.f32 1.442695, %v402_v31 }
 0x115   :  { %841 = vpow2.f32 %v408_v25  ;;  %v430_v59 = vmul.f32 1.442695, %v403_v33  ;;  %v432_v27 = vmul.f32 1.442695, %v404_v35  ;;  %v436_v49 = vmul.f32 1.442695, %v406_v37 }
 0x116   :  { %843 = vpow2.f32 %v412_v28  ;;  %v438_v62 = vmul.f32 1.442695, %v407_v51 }
 0x117   :  { %845 = vpow2.f32 %v414_v30 }
 0x118   :  { %847 = vpow2.f32 %v416_v46 }
 0x119   :  { %849 = vpow2.f32 %v420_v55 }
 0x11a   :  { %851 = vpow2.f32 %v422_v56 }
 0x11b   :  { %v1069_v42 = vpop.eup %833  ;;  %853 = vpow2.f32 %v424_v57 }
 0x11c   :  { %v1071_v60 = vpop.eup %835  ;;  %v456_v61 = vrot.slane %v1069_v42, 7  ;;  %855 = vpow2.f32 %v428_v58 }
 0x11d   :  { %v1074_v29 = vpop.eup %837  ;;  %857 = vpow2.f32 %v430_v59  ;;  %v465_v26 = vrot.slane %v1071_v60, 7 }
 0x11e   :  { %v1076_v54 = vpop.eup %839  ;;  %859 = vpow2.f32 %v432_v27  ;;  %v471_v1 = vrot.slane %v1074_v29, 7 }
 0x11f   :  { %v1078_v63 = vpop.eup %841  ;;  %861 = vpow2.f32 %v436_v49  ;;  %v477_v9 = vrot.slane %v1076_v54, 7 }
 0x120   :  { %v1081_v40 = vpop.eup %843  ;;  %v458_v0 = vsel %vm457_vm1, %v456_v61, %v1078_v63  ;;  %863 = vpow2.f32 %v438_v62  ;;  %v520_v61 = vlaneseq }
 0x121   :  { %v1085_v50 = vpop.eup %845  ;;  %v459_v52 = vrot.slane %v1081_v40, 6 }
 0x122   :  { %v1088_v53 = vpop.eup %847  ;;  %v462_v2 = vrot.slane %v1085_v50, 5 }
 0x123   :  { %v1092_v3 = vpop.eup %849  ;;  %v461_v4 = vsel %vm460_vm2, %v459_v52, %v458_v0  ;;  %v466_v5 = vsel %vm457_vm1, %v465_v26, %v1088_v53 }
 0x124   :  { %v1097_v6 = vpop.eup %851  ;;  %v464_v7 = vsel %vm463_vm3, %v462_v2, %v461_v4  ;;  %v467_v8 = vrot.slane %v1092_v3, 6  ;;  %v521_v2 = vshrl.u32 %v520_v61, 7 }
 0x125   :  { %v1101_v43 = vpop.eup %853  ;;  %v469_v45 = vrot.slane %v1097_v6, 5  ;;  %v488_v10 = vsel %vm487_vm4, %v464_v7, 0.0  ;;  %v93_v7 = vpop.permute.xlu0 %92 }
 0x126   :  { %v1106_v39 = vpop.eup %855  ;;  %v468_v11 = vsel %vm460_vm2, %v467_v8, %v466_v5  ;;  %v489_v47 = vrot.slane %v488_v10, 4  ;;  %v472_v12 = vsel %vm457_vm1, %v471_v1, %v1101_v43 }
 0x127   :  { %v1111_v48 = vpop.eup %857  ;;  %v470_v41 = vsel %vm463_vm3, %v469_v45, %v468_v11  ;;  %v473_v13 = vrot.slane %v1106_v39, 6  ;;  %v1133_v45 = vsub.s32 0, %v521_v2 }
 0x128   :  { %v1115_v44 = vpop.eup %859  ;;  %v490_v14 = vadd.f32 %v489_v47, %v488_v10  ;;  %v495_v15 = vsel %vm487_vm4, %v470_v41, 0.0  ;;  %v475_v16 = vrot.slane %v1111_v48, 5 }
 0x129   :  { %v1119_v17 = vpop.eup %861  ;;  %v496_v18 = vrot.slane %v495_v15, 4  ;;  %v474_v19 = vsel %vm460_vm2, %v473_v13, %v472_v12  ;;  %v478_v20 = vsel %vm457_vm1, %v477_v9, %v1115_v44  ;;  %v98_v9 = vpop.permute.xlu1 %97 }
 0x12a   :  { %v1124_v21 = vpop.eup %863  ;;  %v491_v22 = vrot.slane %v490_v14, 2  ;;  %v476_v23 = vsel %vm463_vm3, %v475_v16, %v474_v19  ;;  %v479_v24 = vrot.slane %v1119_v17, 6  ;;  %v103_v47 = vpop.permute.xlu0 %102 }
 0x12b   :  { %v497_v25 = vadd.f32 %v496_v18, %v495_v15  ;;  %v481_v28 = vrot.slane %v1124_v21, 5  ;;  %v502_v30 = vsel %vm487_vm4, %v476_v23, 0.0  ;;  %v1137_v41 = vadd.f32 %v1014_v32, %v103_v47 }
 0x12c   :  { %v492_v31 = vadd.f32 %v491_v22, %v490_v14  ;;  %v480_v33 = vsel %vm460_vm2, %v479_v24, %v478_v20  ;;  %v503_v35 = vrot.slane %v502_v30, 4  ;;  %v238_v20 = vadd.f32 %v1017_v34, %v93_v7 }
 0x12d   :  { %v498_v37 = vrot.slane %v497_v25, 2  ;;  %v482_v46 = vsel %vm463_vm3, %v481_v28, %v480_v33  ;;  %v108_v14 = vpop.permute.xlu1 %107  ;;  %v241_v23 = vadd.f32 %v1021_v38, %v98_v9 }
 0x12e   :  { %v493_v51 = vrot.slane %v492_v31, 1  ;;  %v504_v55 = vadd.f32 %v503_v35, %v502_v30  ;;  %v509_v56 = vsel %vm487_vm4, %v482_v46, 0.0  ;;  %v249_v22 = vadd.f32 %v1019_v36, %v108_v14 }
 0x12f   :  { %v499_v57 = vadd.f32 %v498_v37, %v497_v25  ;;  %v510_v58 = vrot.slane %v509_v56, 4 }
 0x130   :  { %v494_v59 = vadd.f32 %v493_v51, %v492_v31  ;;  %v505_v27 = vrot.slane %v504_v55, 2 }
 0x131   :  { %v500_v49 = vrot.slane %v499_v57, 1  ;;  %v511_v62 = vadd.f32 %v510_v58, %v509_v56 }
 0x132   :  { %865 = vrcp.f32 %v494_v59  ;;  %v506_v26 = vadd.f32 %v505_v27, %v504_v55 }
 0x133   :  { %v501_v0 = vadd.f32 %v500_v49, %v499_v57  ;;  %v512_v52 = vrot.slane %v511_v62, 2 }
 0x134   :  { %v507_v1 = vrot.slane %v506_v26, 1 }
 0x135   :  { %867 = vrcp.f32 %v501_v0  ;;  %v513_v4 = vadd.f32 %v512_v52, %v511_v62 }
 0x136   :  { %v508_v5 = vadd.f32 %v507_v1, %v506_v26 }
 0x137   :  { %v514_v8 = vrot.slane %v513_v4, 1 }
 0x138   :  { %869 = vrcp.f32 %v508_v5 }
 0x139   :  { %v515_v10 = vadd.f32 %v514_v8, %v513_v4 }
 0x13b   :  { %871 = vrcp.f32 %v515_v10 }
 0x13c   :  { %v866_v11 = vpop.eup %865 }
 0x13d   :  { %v523_v12 = vrot.slane %v866_v11, %v1133_v45 }
 0x13f   :  { %v868_v13 = vpop.eup %867  ;;  %v536_v15 = vmul.f32 %v1078_v63, %v523_v12  ;;  %v537_v16 = vmul.f32 %v1069_v42, %v523_v12  ;;  %v538_v18 = vmul.f32 %v1081_v40, %v523_v12  ;;  %v539_v19 = vmul.f32 %v1085_v50, %v523_v12 }
 0x140   :  { %v527_v24 = vrot.slane %v868_v13, %v1133_v45 }
 0x141   :  { %v555_v32 = vrot.slane %v536_v15, %v1133_v45  ;;  %v559_v25 = vrot.slane %v537_v16, %v1133_v45  ;;  %v563_v63 = vrot.slane %v538_v18, %v1133_v45  ;;  %v567_v42 = vrot.slane %v539_v19, %v1133_v45 }
 0x142   :  { %v870_v28 = vpop.eup %869  ;;  %v540_v40 = vmul.f32 %v1088_v53, %v527_v24  ;;  %v541_v50 = vmul.f32 %v1071_v60, %v527_v24  ;;  %v542_v34 = vmul.f32 %v1092_v3, %v527_v24  ;;  %v543_v36 = vmul.f32 %v1097_v6, %v527_v24 }
 0x143   :  { %v616_v38 = vmul.f32 %v555_v32, %v238_v20  ;;  %v617_v30 = vmul.f32 %v559_v25, %v241_v23  ;;  %v618_v31 = vmul.f32 %v563_v63, %v1137_v41  ;;  %v619_v33 = vmul.f32 %v567_v42, %v249_v22  ;;  %v832_v63 = vld [vmem:[%s1200_s3 + $0x8] sm:$0xff]   ;;  %s873_s3 = scalar_lea.vmem %s749_s16, 512 }
 0x144   :  { %v571_v35 = vrot.slane %v540_v40, %v1133_v45  ;;  %v575_v37 = vrot.slane %v541_v50, %v1133_v45  ;;  %v579_v46 = vrot.slane %v542_v34, %v1133_v45  ;;  %v583_v51 = vrot.slane %v543_v36, %v1133_v45  ;;  %p874_p0 = scmp.ne.s32.totalorder %s749_s16, %s873_s3  ;;  %p879_p2 = scmp.lt.s32.totalorder %s873_s3, %s873_s3 }
 0x145   :  { %v872_v53 = vpop.eup %871  ;;  %v632_v55 = vadd.f32 %v617_v30, %v616_v38  ;;  %v531_v60 = vrot.slane %v870_v28, %v1133_v45 }
 0x146   :  { %v620_v3 = vmul.f32 %v571_v35, %v238_v20  ;;  %v621_v56 = vmul.f32 %v575_v37, %v241_v23  ;;  %v622_v6 = vmul.f32 %v579_v46, %v1137_v41  ;;  %v623_v57 = vmul.f32 %v583_v51, %v249_v22  ;;  %p880_p3 = por %p879_p2, %p878_p1 }
 0x147   :  { %v633_v58 = vadd.f32 %v632_v55, %v618_v31  ;;  %v535_v59 = vrot.slane %v872_v53, %v1133_v45  ;;  %v544_v27 = vmul.f32 %v1101_v43, %v531_v60  ;;  %v545_v49 = vmul.f32 %v1074_v29, %v531_v60 }
 0x148   :  { %v635_v61 = vadd.f32 %v621_v56, %v620_v3  ;;  %v546_v62 = vmul.f32 %v1106_v39, %v531_v60  ;;  %v547_v26 = vmul.f32 %v1111_v48, %v531_v60  ;;  %p881_p4 = pnand %p880_p3, %p874_p0 }
 0x149   :  { %v634_v0 = vadd.f32 %v633_v58, %v619_v33  ;;  %v548_v52 = vmul.f32 %v1115_v44, %v535_v59  ;;  %v549_v1 = vmul.f32 %v1076_v54, %v535_v59  ;;  %v550_v2 = vmul.f32 %v1119_v17, %v535_v59 }
 0x14a   :  { %v636_v4 = vadd.f32 %v635_v61, %v622_v6  ;;  %v551_v5 = vmul.f32 %v1124_v21, %v535_v59  ;;  %v587_v7 = vrot.slane %v544_v27, %v1133_v45  ;;  %v591_v43 = vrot.slane %v545_v49, %v1133_v45 }
 0x14b   :  { %v595_v29 = vrot.slane %v546_v62, %v1133_v45  ;;  %v599_v39 = vrot.slane %v547_v26, %v1133_v45  ;;  %v603_v48 = vrot.slane %v548_v52, %v1133_v45  ;;  %v607_v8 = vrot.slane %v549_v1, %v1133_v45 }
 0x14c   :  { %v637_v44 = vadd.f32 %v636_v4, %v623_v57  ;;  %v611_v54 = vrot.slane %v550_v2, %v1133_v45  ;;  %v615_v17 = vrot.slane %v551_v5, %v1133_v45  ;;  %v624_v9 = vmul.f32 %v587_v7, %v238_v20 }
 0x14d   :  { %v625_v10 = vmul.f32 %v591_v43, %v241_v23  ;;  %v626_v21 = vmul.f32 %v595_v29, %v1137_v41  ;;  %v627_v11 = vmul.f32 %v599_v39, %v249_v22  ;;  %v628_v47 = vmul.f32 %v603_v48, %v238_v20  ;;  %v657_v20 = vpop.permute.xlu0 %656 }
 0x14e   :  { %v644_v12 = vpack.c.bf16 %v637_v44, %v634_v0  ;;  %v629_v13 = vmul.f32 %v607_v8, %v241_v23  ;;  %v630_v14 = vmul.f32 %v611_v54, %v1137_v41  ;;  %v631_v15 = vmul.f32 %v615_v17, %v249_v22  ;;  %v662_v41 = vpop.permute.xlu1 %661 }
 0x14f   :  { %v638_v16 = vadd.f32 %v625_v10, %v624_v9 }
 0x150   :  { %805 = vmatprep.subr.bf16.mxu1 %v644_v12  ;;  %v641_v18 = vadd.f32 %v629_v13, %v628_v47 }
 0x151   :  { %806 = vmatpush3.bf16.msra.mxu1 %v644_v12  ;;  %v639_v19 = vadd.f32 %v638_v16, %v626_v21  ;;  %v667_v22 = vpop.permute.xlu0 %666 }
 0x152   :  { %v642_v24 = vadd.f32 %v641_v18, %v630_v14  ;;  %v672_v40 = vpop.permute.xlu1 %671 }
 0x153   :  { %v640_v32 = vadd.f32 %v639_v19, %v627_v11 }
 0x154   :  { %v643_v25 = vadd.f32 %v642_v24, %v631_v15 }
 0x156   :  { %v645_v45 = vpack.c.bf16 %v643_v25, %v640_v32 }
 0x158   :  { %807 = vmatprep.subr.bf16.mxu1 %v645_v45 }
 0x159   :  { %808 = vmatpush3.bf16.msra.mxu1 %v645_v45 }
 0x15c   :  { %810 = vmatmul.mubr.msk.bf16.vlgmr.msra.gmra.mrb[4].mxu1 %vm152_vm0, %v832_v63 }
 0x22f   :  { %v811_v23 = vpop.f32.mrb[4].mxu1 }
 0x230   :  { %v733_v42 = vadd.f32 %v811_v23, %v667_v22  ;;  %v724_v28 = vpop.f32.mrb[5].mxu1 }
 0x231   :  { %v725_v50 = vadd.f32 %v724_v28, %v657_v20  ;;  %v812_v34 = vpop.f32.mrb[6].mxu1 }
 0x232   :  { %741 = vst [vmem:[#allocation2 + $0x10] sm:$0xff] %v733_v42  ;;  %v736_v36 = vadd.f32 %v812_v34, %v672_v40  ;;  %v727_v38 = vpop.f32.mrb[7].mxu1 }
 0x233   :  { %739 = vst [vmem:[#allocation2] sm:$0xff] %v725_v50  ;;  %v728_v30 = vadd.f32 %v727_v38, %v662_v41 }
 0x234   :  { %742 = vst [vmem:[#allocation2 + $0x18] sm:$0xff] %v736_v36 }
 0x235   :  { %740 = vst [vmem:[#allocation2 + $0x8] sm:$0xff] %v728_v30 }
 0x236   :  { %884 = shalt.err (!%p881_p4)
}
 0x237   :  { %s885_s19 = scalar_lea.hbm %s1202_s5, 512 }
 0x238   :  { %p886_p5 = scmp.ne.s32.totalorder %s1202_s5, %s885_s19  ;;  %p889_p6 = scmp.lt.u32.totalorder %s885_s19, %s1202_s5 }
 0x23a   :  { %p891_p7 = pnand %p889_p6, %p886_p5 }
 0x23c   :  { %894 = shalt.err (!%p891_p7)
}
 0x23d   :  { %s899_s23 = smov 128   ;;  %s900_s24 = smov 8  }
 0x23e   :  { %754 = dma.vmem_to_hbm [thread:$0]  %s749_s16, 512, %s1202_s5, [#allocation3], %s899_s23, %s899_s23, %s900_s24  }
 0x23f   :  { %895 = dma.done.wait [#allocation3], 512  }
 0x240   :  { %896 = vsyncadd [#allocation3], 4294966784 }
 0x241   :  { %758 = vsyncpa [#allocation3], 1 }

</bundles_post_ra>
